<compile_context>
chip_gen: v5e
topology: v5e:2x2
jax: 0.10.0
libtpu: 0.0.40
codegen_flags: <defaults>
</compile_context>

<pallas_src>
import jax
import jax.numpy as jnp
from jax.experimental import pallas as pl
from jax.experimental.pallas import tpu as pltpu

LANES = 128  # vreg lane width; last block dim is always a full 128 lanes


def xor_kernel(params_ref, x_ref, o_ref):
    # x_ref: (2, rb, 128) f32 -- feature-major, batch dense over (sublanes, lanes).
    # o_ref: (rb, 128) f32    -- lane/sublane-dense output slab (unmasked vst).
    # params_ref: (9,) f32 in SMEM:
    #   [w1_00, w1_01, w1_10, w1_11, b1_0, b1_1, w2_00, w2_10, b2_0]
    x0 = x_ref[0]                           # (rb, 128) feature 0
    x1 = x_ref[1]                           # (rb, 128) feature 1

    w1_00 = params_ref[0]
    w1_01 = params_ref[1]
    w1_10 = params_ref[2]
    w1_11 = params_ref[3]
    b1_0 = params_ref[4]
    b1_1 = params_ref[5]
    w2_00 = params_ref[6]
    w2_10 = params_ref[7]
    b2_0 = params_ref[8]

    # fc1: two VPU FMAs per hidden unit (no MXU) on full dense vregs.
    h0 = x0 * w1_00 + x1 * w1_10 + b1_0     # (rb, 128)
    h1 = x0 * w1_01 + x1 * w1_11 + b1_1     # (rb, 128)

    # Exact sigmoid with a single EUP op per hidden unit:
    #   sigmoid(h) = 0.5 * tanh(0.5 * h) + 0.5
    s0 = 0.5 * jnp.tanh(0.5 * h0) + 0.5
    s1 = 0.5 * jnp.tanh(0.5 * h1) + 0.5

    # fc2: two more VPU FMAs; dense (rb, 128) store.
    o_ref[...] = (s0 * w2_00 + s1 * w2_10 + b2_0).astype(o_ref.dtype)


def _batch_dim_semantics():
    # v7x has 2 TensorCores per chip: CORE_PARALLEL actually splits the batch grid
    # across them.  On single-TC chips (v5e/v6e) keep the plain string semantics.
    kind = jax.devices()[0].device_kind.lower()
    if ("v7" in kind) or ("7x" in kind):
        return (pltpu.CORE_PARALLEL,)
    return ("parallel",)


def xor_forward(x, w1, b1, w2, b2, *, row_block=2048):
    """y = sigmoid(x @ w1 + b1) @ w2 + b2 with weights stored (in, out).

    x: (B, 2) float. Returns (B, 1) float32.
    row_block rows of 128 samples per grid step (default 2048 -> 256K samples,
    ~3 MiB of VMEM per step before double-buffering).
    """
    B = x.shape[0]

    # Pack the 9 parameter scalars into one SMEM buffer (single tiny transfer).
    params = jnp.concatenate(
        [w1.reshape(-1), b1.reshape(-1), w2.reshape(-1), b2.reshape(-1)]
    ).astype(jnp.float32)                                    # (9,)

    # Sublane+lane-dense layout: sample s -> (row s // 128, lane s % 128).
    rows_needed = pl.cdiv(B, LANES)
    rb = min(row_block, max(8, pl.cdiv(rows_needed, 8) * 8))  # rows per grid step
    assert rb % 8 == 0 and LANES == 128                       # (8,128) block guard
    rows = pl.cdiv(rows_needed, rb) * rb                      # padded row count
    Bp = rows * LANES                                         # padded batch

    # Single pad + transpose (no zeros+scatter); the reshape to (2, rows, 128) is free.
    # TODO(synk): hot-loop callers should pass x pre-transposed / feature-major to skip
    # this one extra HBM pass entirely.
    xt = jnp.pad(x.astype(jnp.float32), ((0, Bp - B), (0, 0))).T.reshape(2, rows, LANES)

    out = pl.pallas_call(
        xor_kernel,
        out_shape=jax.ShapeDtypeStruct((rows, LANES), jnp.float32),
        grid=(rows // rb,),
        in_specs=[
            # Whole packed-parameter vector lives in SMEM (scalar reads in-kernel).
            pl.BlockSpec(memory_space=pltpu.MemorySpace.SMEM),
            # Dense feature-major batch slabs: (2, rb, 128) per grid step.
            pl.BlockSpec((2, rb, LANES), lambda i: (0, i, 0)),
        ],
        out_specs=pl.BlockSpec((rb, LANES), lambda i: (i, 0)),
        compiler_params=pltpu.CompilerParams(
            dimension_semantics=_batch_dim_semantics()),
    )(params, xt)

    # (rows,128) -> (Bp,) reshape is free; the [:B] slice only copies when padded.
    return out.reshape(Bp)[:B].reshape(B, 1)


def init_params(key):
    # Deterministic init mimicking nn.Linear's U(-1/sqrt(fan_in), 1/sqrt(fan_in)).
    k1, k2, k3, k4 = jax.random.split(key, 4)
    bound = 1.0 / jnp.sqrt(2.0)                               # fan_in = 2 for both layers
    w1 = jax.random.uniform(k1, (2, 2), jnp.float32, -bound, bound)   # (in, out)
    b1 = jax.random.uniform(k2, (1, 2), jnp.float32, -bound, bound)
    w2 = jax.random.uniform(k3, (2, 1), jnp.float32, -bound, bound)   # (in, out)
    b2 = jax.random.uniform(k4, (1, 1), jnp.float32, -bound, bound)
    return w1, b1, w2, b2


if __name__ == "__main__":
    key = jax.random.PRNGKey(0)
    w1, b1, w2, b2 = init_params(key)

    # Classic XOR truth-table inputs: batch = 4, features = 2.
    x = jnp.array([[0.0, 0.0],
                   [0.0, 1.0],
                   [1.0, 0.0],
                   [1.0, 1.0]], dtype=jnp.float32)

    out = xor_forward(x, w1, b1, w2, b2)
    jax.block_until_ready(out)

    ref = jax.nn.sigmoid(x @ w1 + b1) @ w2 + b2
    assert out.shape == (4, 1)
    # Exact (non-approx) sigmoid in-kernel -> tight tolerance.
    assert jnp.allclose(out, ref, atol=1e-4, rtol=1e-4), (out, ref)

    # Larger batch: exercises lane/row padding (single big block).
    xb = jax.random.uniform(jax.random.PRNGKey(1), (1500, 2), jnp.float32)
    outb = xor_forward(xb, w1, b1, w2, b2)
    jax.block_until_ready(outb)
    refb = jax.nn.sigmoid(xb @ w1 + b1) @ w2 + b2
    assert outb.shape == (1500, 1)
    assert jnp.allclose(outb, refb, atol=1e-4, rtol=1e-4), \
        float(jnp.max(jnp.abs(outb - refb)))

    # Force a multi-step grid (row_block=8 -> 2 grid steps) to exercise tiling.
    outb2 = xor_forward(xb, w1, b1, w2, b2, row_block=8)
    jax.block_until_ready(outb2)
    assert jnp.allclose(outb2, refb, atol=1e-4, rtol=1e-4), \
        float(jnp.max(jnp.abs(outb2 - refb)))

    print("KERNEL_OK")
</pallas_src>

<mosaic_0001>
module attributes {stable_mosaic.version = 11 : i64} {
  func.func @xor_kernel(%arg0: i32, %arg1: memref<9xf32, #tpu.memory_space<smem>>, %arg2: memref<2x8x128xf32, #tpu.memory_space<vmem>>, %arg3: memref<8x128xf32, #tpu.memory_space<vmem>>) attributes {dimension_semantics = [#tpu.dimension_semantics<parallel>], iteration_bounds = array<i64: 1>, scalar_prefetch = 0 : i64, scratch_operands = 0 : i64, tpu.core_type = #tpu.core_type<tc>, window_params = [{transform_indices = @transform_0, window_bounds = array<i64: 9>}, {transform_indices = @transform_1, window_bounds = array<i64: 2, 8, 128>}, {transform_indices = @transform_2, window_bounds = array<i64: 8, 128>}]} {
    %c0 = arith.constant 0 : index
    %c0_0 = arith.constant 0 : index
    %c0_1 = arith.constant 0 : index
    %0 = vector.load %arg2[%c0, %c0_0, %c0_1] : memref<2x8x128xf32, #tpu.memory_space<vmem>>, vector<1x8x128xf32>
    %1 = vector.shape_cast %0 : vector<1x8x128xf32> to vector<8x128xf32>
    %c1 = arith.constant 1 : index
    %c0_2 = arith.constant 0 : index
    %c0_3 = arith.constant 0 : index
    %2 = vector.load %arg2[%c1, %c0_2, %c0_3] : memref<2x8x128xf32, #tpu.memory_space<vmem>>, vector<1x8x128xf32>
    %3 = vector.shape_cast %2 : vector<1x8x128xf32> to vector<8x128xf32>
    %c0_4 = arith.constant 0 : index
    %4 = memref.load %arg1[%c0_4] : memref<9xf32, #tpu.memory_space<smem>>
    %c1_5 = arith.constant 1 : index
    %5 = memref.load %arg1[%c1_5] : memref<9xf32, #tpu.memory_space<smem>>
    %c2 = arith.constant 2 : index
    %6 = memref.load %arg1[%c2] : memref<9xf32, #tpu.memory_space<smem>>
    %c3 = arith.constant 3 : index
    %7 = memref.load %arg1[%c3] : memref<9xf32, #tpu.memory_space<smem>>
    %c4 = arith.constant 4 : index
    %8 = memref.load %arg1[%c4] : memref<9xf32, #tpu.memory_space<smem>>
    %c5 = arith.constant 5 : index
    %9 = memref.load %arg1[%c5] : memref<9xf32, #tpu.memory_space<smem>>
    %c6 = arith.constant 6 : index
    %10 = memref.load %arg1[%c6] : memref<9xf32, #tpu.memory_space<smem>>
    %c7 = arith.constant 7 : index
    %11 = memref.load %arg1[%c7] : memref<9xf32, #tpu.memory_space<smem>>
    %c8 = arith.constant 8 : index
    %12 = memref.load %arg1[%c8] : memref<9xf32, #tpu.memory_space<smem>>
    %13 = vector.broadcast %4 : f32 to vector<8x128xf32>
    %14 = arith.mulf %1, %13 : vector<8x128xf32>
    %15 = vector.broadcast %6 : f32 to vector<8x128xf32>
    %16 = arith.mulf %3, %15 : vector<8x128xf32>
    %17 = arith.addf %14, %16 : vector<8x128xf32>
    %18 = vector.broadcast %8 : f32 to vector<8x128xf32>
    %19 = arith.addf %17, %18 : vector<8x128xf32>
    %20 = vector.broadcast %5 : f32 to vector<8x128xf32>
    %21 = arith.mulf %1, %20 : vector<8x128xf32>
    %22 = vector.broadcast %7 : f32 to vector<8x128xf32>
    %23 = arith.mulf %3, %22 : vector<8x128xf32>
    %24 = arith.addf %21, %23 : vector<8x128xf32>
    %25 = vector.broadcast %9 : f32 to vector<8x128xf32>
    %26 = arith.addf %24, %25 : vector<8x128xf32>
    %cst = arith.constant 5.000000e-01 : f32
    %27 = vector.broadcast %cst : f32 to vector<8x128xf32>
    %28 = arith.mulf %27, %19 : vector<8x128xf32>
    %29 = math.tanh %28 : vector<8x128xf32>
    %cst_6 = arith.constant 5.000000e-01 : f32
    %30 = vector.broadcast %cst_6 : f32 to vector<8x128xf32>
    %31 = arith.mulf %30, %29 : vector<8x128xf32>
    %cst_7 = arith.constant 5.000000e-01 : f32
    %32 = vector.broadcast %cst_7 : f32 to vector<8x128xf32>
    %33 = arith.addf %31, %32 : vector<8x128xf32>
    %cst_8 = arith.constant 5.000000e-01 : f32
    %34 = vector.broadcast %cst_8 : f32 to vector<8x128xf32>
    %35 = arith.mulf %34, %26 : vector<8x128xf32>
    %36 = math.tanh %35 : vector<8x128xf32>
    %cst_9 = arith.constant 5.000000e-01 : f32
    %37 = vector.broadcast %cst_9 : f32 to vector<8x128xf32>
    %38 = arith.mulf %37, %36 : vector<8x128xf32>
    %cst_10 = arith.constant 5.000000e-01 : f32
    %39 = vector.broadcast %cst_10 : f32 to vector<8x128xf32>
    %40 = arith.addf %38, %39 : vector<8x128xf32>
    %41 = vector.broadcast %10 : f32 to vector<8x128xf32>
    %42 = arith.mulf %33, %41 : vector<8x128xf32>
    %43 = vector.broadcast %11 : f32 to vector<8x128xf32>
    %44 = arith.mulf %40, %43 : vector<8x128xf32>
    %45 = arith.addf %42, %44 : vector<8x128xf32>
    %46 = vector.broadcast %12 : f32 to vector<8x128xf32>
    %47 = arith.addf %45, %46 : vector<8x128xf32>
    %c0_11 = arith.constant 0 : index
    %c0_12 = arith.constant 0 : index
    %48 = vector.load %arg3[%c0_11, %c0_12] : memref<8x128xf32, #tpu.memory_space<vmem>>, vector<8x128xf32>
    tpu.vector_store %arg3[%c0_11, %c0_12], %47 {strides = array<i32>} : memref<8x128xf32, #tpu.memory_space<vmem>>, vector<8x128xf32>,
    return
  }
  func.func @transform_0(%arg0: i32) -> i32 {
    %c0_i32 = arith.constant 0 : i32
    %c0_i32_0 = arith.constant 0 : i32
    return %c0_i32 : i32
  }
  func.func @transform_1(%arg0: i32) -> (i32, i32, i32) {
    %c0_i32 = arith.constant 0 : i32
    %c0_i32_0 = arith.constant 0 : i32
    %c0_i32_1 = arith.constant 0 : i32
    return %c0_i32, %arg0, %c0_i32_0 : i32, i32, i32
  }
  func.func @transform_2(%arg0: i32) -> (i32, i32) {
    %c0_i32 = arith.constant 0 : i32
    %c0_i32_0 = arith.constant 0 : i32
    return %arg0, %c0_i32 : i32, i32
  }
}

</mosaic_0001>

<bundles_post_ra>
// kernel: tpu_custom_call.1
= control target key start
LH: loop header
LB: loop body
LE: loop exit
PB: predicated region body
PF: predicated region fallthrough
CT: control target
= control target key end

     0   :  { %7 = vsyncpa [#allocation5], 0  ;;  %s213_s0 = inlined_call_operand.hbm [shape: f32[9], index: 0, kind: input, shape index: {}]   ;;  %s214_s1 = inlined_call_operand.hbm [shape: f32[2,8,128], index: 1, kind: input, shape index: {}]   ;;  %s215_s2 = inlined_call_operand.hbm [shape: f32[8,128], index: 2, kind: output, shape index: {}]  }
   0x1   :  { %8 = vsyncpa [#allocation3], 0 }
   0x2   :  { %9 = vsyncpa [#allocation4], 0  ;;  %s15_s11 = sshll.u32 %s213_s0, 4  ;;  %s23_s14 = sshll.u32 %s214_s1, 4  ;;  %s16_s11 = int_to_ptr.hbm [resolvable:$true] %s15_s11  ;;  %s24_s14 = int_to_ptr.hbm [resolvable:$true] %s23_s14 }
   0x3   :  { %s184_s15 = smov [#allocation2]   ;;  %s185_s16 = smov [#allocation6]  }
   0x4   :  { %18 = dma.hbm_to_smem %s16_s11, 16, %s184_s15, [#allocation5]  }
   0x5   :  { %s25_s17 = sshll.u32 %s185_s16, 4  ;;  %s186_s18 = smov 128   ;;  %s26_s17 = int_to_ptr.vmem [resolvable:$true] %s25_s17 }
   0x6   :  { %s187_s19 = smov 8  }
   0x7   :  { %31 = dma.hbm_to_vmem [thread:$0]  %s24_s14, 256, %s26_s17, [#allocation3], %s186_s18, %s186_s18, %s187_s19  }
   0x8   :  { %178 = dma.done.wait [#allocation5], 16  }
   0x9   :  { %179 = vsyncadd [#allocation5], 4294967280 }
   0xa   :  { %180 = dma.done.wait [#allocation3], 256  }
   0xb   :  { %181 = vsyncadd [#allocation3], 4294967040 }
   0xc   :  { %40 = sfence }
   0xd   :  { %s44_s0 = sld [smem:[#allocation2]]  ;;  %v41_v0 = vld [vmem:[#allocation6] sm:$0xff]  ;;  %v43_v1 = vld [vmem:[#allocation6 + $0x8] sm:$0xff]  ;;  %s188_s27 = smov [#allocation7]  }
   0xe   :  { %s101_s20 = sld [smem:[#allocation2 + $0x1]]  ;;  %s88_s28 = sshll.u32 %s188_s27, 4  ;;  %s89_s28 = int_to_ptr.vmem [resolvable:$true] %s88_s28 }
   0xf   :  { %s102_s21 = sld [smem:[#allocation2 + $0x2]]  ;;  %s90_s3 = sshll.u32 %s215_s2, 4  ;;  %s91_s3 = int_to_ptr.hbm [resolvable:$true] %s90_s3 }
  0x10   :  { %s103_s22 = sld [smem:[#allocation2 + $0x3]] }
  0x11   :  { %s104_s1 = sld [smem:[#allocation2 + $0x4]] }
  0x12   :  { %s105_s23 = sld [smem:[#allocation2 + $0x5]] }
  0x13   :  { %v53_v2 = vstv %s44_s0  ;;  %s106_s24 = sld [smem:[#allocation2 + $0x6]] }
  0x14   :  { %v54_v3 = vmul.f32 %v53_v2, %v41_v0  ;;  %v60_v4 = vstv %s101_s20  ;;  %s107_s25 = sld [smem:[#allocation2 + $0x7]] }
  0x15   :  { %v55_v5 = vstv %s102_s21  ;;  %v61_v6 = vmul.f32 %v60_v4, %v41_v0  ;;  %s108_s26 = sld [smem:[#allocation2 + $0x8]] }
  0x16   :  { %v56_v7 = vmul.f32 %v55_v5, %v43_v1  ;;  %v62_v8 = vstv %s103_s22 }
  0x17   :  { %v58_v9 = vstv %s104_s1  ;;  %v63_v10 = vmul.f32 %v62_v8, %v43_v1 }
  0x18   :  { %v57_v11 = vadd.f32 %v56_v7, %v54_v3  ;;  %v65_v12 = vstv %s105_s23 }
  0x19   :  { %v64_v13 = vadd.f32 %v63_v10, %v61_v6  ;;  %v75_v22 = vstv %s106_s24 }
  0x1a   :  { %v59_v14 = vadd.f32 %v58_v9, %v57_v11  ;;  %v77_v24 = vstv %s107_s25 }
  0x1b   :  { %v66_v15 = vadd.f32 %v65_v12, %v64_v13  ;;  %v80_v28 = vstv %s108_s26 }
  0x1c   :  { %v67_v16 = vmul.f32 0.5, %v59_v14 }
  0x1d   :  { %v71_v17 = vmul.f32 0.5, %v66_v15 }
  0x1e   :  { %114 = vtanh.f32 %v67_v16 }
  0x1f   :  { %116 = vtanh.f32 %v71_v17 }
  0x24   :  { %v115_v18 = vpop.eup %114 }
  0x25   :  { %v117_v19 = vpop.eup %116  ;;  %v69_v20 = vmul.f32 0.5, %v115_v18 }
  0x26   :  { %v73_v21 = vmul.f32 0.5, %v117_v19 }
  0x27   :  { %v70_v23 = vadd.f32 0.5, %v69_v20 }
  0x28   :  { %v74_v25 = vadd.f32 0.5, %v73_v21 }
  0x29   :  { %v76_v26 = vmul.f32 %v75_v22, %v70_v23 }
  0x2a   :  { %v78_v27 = vmul.f32 %v77_v24, %v74_v25 }
  0x2c   :  { %v79_v29 = vadd.f32 %v78_v27, %v76_v26 }
  0x2e   :  { %v81_v30 = vadd.f32 %v80_v28, %v79_v29 }
  0x30   :  { %82 = vst [vmem:[#allocation7] sm:$0xff] %v81_v30 }
  0x31   :  { %93 = dma.vmem_to_hbm [thread:$0]  %s89_s28, 128, %s91_s3, [#allocation4]  }
  0x32   :  { %182 = dma.done.wait [#allocation4], 128  }
  0x33   :  { %183 = vsyncadd [#allocation4], 4294967168 }
  0x34   :  { %98 = vsyncpa [#allocation3], 1 }
  0x35   :  { %99 = vsyncpa [#allocation4], 1 }
  0x36   :  { %100 = vsyncpa [#allocation5], 1 }

</bundles_post_ra>
